<compile_context>
chip_gen: v7x
topology: tpu7x:2x2x1
jax: 0.10.0
libtpu: 0.0.40
codegen_flags: <defaults>
</compile_context>

<pallas_src>
import jax
import jax.numpy as jnp
from jax.experimental import pallas as pl
from jax.experimental.pallas import tpu as pltpu


def dnn_kernel(x_ref, w1_ref, b1_ref, w2_ref, b2_ref, out_ref):
    # Cast x to bf16 in-kernel (VPU work hidden under DMA slack; saves a separate
    # HBM cast pass in the wrapper).
    x = x_ref[...].astype(jnp.bfloat16)
    # h = relu(x @ W1 + b1): bf16 MXU inputs, f32 accumulate, f32 bias/ReLU (VPU).
    h = jnp.dot(x, w1_ref[...], preferred_element_type=jnp.float32)
    h = jnp.maximum(h + b1_ref[...], 0.0)
    # out = h @ W2 + b2: cast h to bf16 for the MXU, keep f32 accumulation.
    out = jnp.dot(h.astype(jnp.bfloat16), w2_ref[...], preferred_element_type=jnp.float32)
    out_ref[...] = (out + b2_ref[...]).astype(out_ref.dtype)


def _round_up(n, m):
    return ((n + m - 1) // m) * m


def _pick_tm(batch, tm_max):
    """Batch-tile rows per grid step."""
    sub = 16 if batch >= 16 else 8          # 16-row rounding for bf16 sublane packing
    tm = min(tm_max, _round_up(batch, sub))
    # v7x megacore: keep >= 2 grid steps on the "parallel" batch axis when batch is
    # big enough that splitting it is worthwhile (no effect on v5e/v6e correctness).
    if batch >= 1024 and pl.cdiv(batch, tm) < 2:
        tm = _round_up(pl.cdiv(batch, 2), 16)
    return tm


def make_dnn_forward(w1, b1, w2, b2, *, tm=512, out_dtype=jnp.float32):
    """One-time prep of DNN params; returns a jitted forward(x) whose hot path is a
    single pallas_call.

    PyTorch layouts: w1: (h1, in), b1: (1, h1) or (h1,), w2: (h2, h1), b2: (1, h2) or (h2,).
    """
    hidden1, in_size = w1.shape
    hidden2 = w2.shape[0]

    # --- one-time layout / dtype prep (NOT on the per-call hot path) -------------
    w1t = jnp.asarray(w1.T, dtype=jnp.bfloat16)            # (in_size, hidden1)
    w2t = jnp.asarray(w2.T, dtype=jnp.bfloat16)            # (hidden1, hidden2)
    b1r = jnp.asarray(b1, dtype=jnp.float32).reshape(1, hidden1)
    b2r = jnp.asarray(b2, dtype=jnp.float32).reshape(1, hidden2)

    # Lane-dense output: pad the final feature dim up to a multiple of 128.
    h2_pad = _round_up(hidden2, 128)
    if h2_pad != hidden2:
        w2t = jnp.pad(w2t, ((0, 0), (0, h2_pad - hidden2)))
        b2r = jnp.pad(b2r, ((0, 0), (0, h2_pad - hidden2)))

    # Materialize the prepped weights now so the prep cost is truly one-time.
    w1t, b1r, w2t, b2r = jax.block_until_ready((w1t, b1r, w2t, b2r))
    out_bytes = jnp.dtype(out_dtype).itemsize

    @jax.jit
    def forward(x):
        batch = x.shape[0]
        tm_eff = _pick_tm(batch, tm)
        grid = (pl.cdiv(batch, tm_eff),)                   # ragged last tile handled by Pallas

        # Resident VMEM footprint (default double-buffering of every block).  Only
        # raise the scoped-VMEM limit when actually needed — matters on v7x where
        # the default scoped limit is 32 MiB of a 64 MiB physical budget.
        vmem_bytes = 2 * (
            tm_eff * in_size * 4            # x tile (f32)
            + in_size * hidden1 * 2         # W1^T (bf16)
            + hidden1 * 4                   # b1 (f32)
            + hidden1 * h2_pad * 2          # W2^T (bf16, padded)
            + h2_pad * 4                    # b2 (f32, padded)
            + tm_eff * h2_pad * out_bytes   # out tile
        )
        compiler_kwargs = dict(dimension_semantics=("parallel",))
        if vmem_bytes > 24 * 1024 * 1024:
            # If the weights ever outgrow VMEM entirely, the right fix is a
            # hidden1/hidden2-tiled grid rather than a bigger limit.
            compiler_kwargs["vmem_limit_bytes"] = min(vmem_bytes + (8 << 20), 100 << 20)

        out = pl.pallas_call(
            dnn_kernel,
            out_shape=jax.ShapeDtypeStruct((batch, h2_pad), out_dtype),
            grid=grid,
            in_specs=[
                pl.BlockSpec((tm_eff, in_size), lambda i: (i, 0)),      # x tile (f32), pipelined over batch
                pl.BlockSpec((in_size, hidden1), lambda i: (0, 0)),     # W1^T, VMEM-resident
                pl.BlockSpec((1, hidden1), lambda i: (0, 0)),           # b1
                pl.BlockSpec((hidden1, h2_pad), lambda i: (0, 0)),      # W2^T (padded), VMEM-resident
                pl.BlockSpec((1, h2_pad), lambda i: (0, 0)),            # b2 (padded)
            ],
            out_specs=pl.BlockSpec((tm_eff, h2_pad), lambda i: (i, 0)),
            compiler_params=pltpu.CompilerParams(**compiler_kwargs),
        )(x, w1t, b1r, w2t, b2r)

        # Slice off the padded hidden2 lanes inside the same jit.
        return out[:, :hidden2]

    return forward


def reference_forward(x, w1, b1, w2, b2):
    # Mirrors the kernel's numerics: bf16 MXU inputs, f32 accumulation, f32 bias/ReLU.
    xb = x.astype(jnp.bfloat16)
    w1b = w1.astype(jnp.bfloat16)
    w2b = w2.astype(jnp.bfloat16)
    h = jnp.maximum(jnp.dot(xb, w1b.T, preferred_element_type=jnp.float32) + b1, 0.0)
    return jnp.dot(h.astype(jnp.bfloat16), w2b.T, preferred_element_type=jnp.float32) + b2


if __name__ == "__main__":
    # Sizes implied by the module: input_size, hidden1_size, hidden2_size, num_classes.
    batch = 8
    input_size = 32
    hidden1_size = 64
    hidden2_size = 32
    num_classes = 10  # l3 would map hidden2 -> num_classes, but forward() never uses it.

    key = jax.random.PRNGKey(0)
    kx, k1, kb1, k2, kb2, k3, kb3 = jax.random.split(key, 7)

    x = jax.random.normal(kx, (batch, input_size), dtype=jnp.float32)

    # Deterministic PyTorch-Linear-style init (uniform in +/- 1/sqrt(fan_in)).
    def linear_init(kw, kb, out_f, in_f):
        bound = 1.0 / jnp.sqrt(in_f)
        w = jax.random.uniform(kw, (out_f, in_f), jnp.float32, -bound, bound)
        b = jax.random.uniform(kb, (1, out_f), jnp.float32, -bound, bound)
        return w, b

    w1, b1 = linear_init(k1, kb1, hidden1_size, input_size)
    w2, b2 = linear_init(k2, kb2, hidden2_size, hidden1_size)
    w3, b3 = linear_init(k3, kb3, num_classes, hidden2_size)  # unused in forward (matches PyTorch)

    # One-time param prep; hot path is the returned jitted forward.
    dnn_forward = make_dnn_forward(w1, b1, w2, b2)

    out = dnn_forward(x)
    out = jax.block_until_ready(out)

    ref = reference_forward(x, w1, b1, w2, b2)
    ref_f32 = jnp.maximum(x @ w1.T + b1, 0.0) @ w2.T + b2

    assert out.shape == (batch, hidden2_size)
    assert jnp.allclose(out, ref, atol=1e-3, rtol=1e-3)          # kernel matches bf16-MXU reference
    assert jnp.allclose(out, ref_f32, atol=5e-2, rtol=5e-2)      # sane vs full-f32 math (bf16 rounding)

    print("KERNEL_OK")
</pallas_src>

<mosaic_0001>
module attributes {stable_mosaic.version = 11 : i64} {
  func.func @dnn_kernel(%arg0: i32, %arg1: memref<8x32xf32, #tpu.memory_space<vmem>>, %arg2: memref<32x64xbf16, #tpu.memory_space<vmem>>, %arg3: memref<1x64xf32, #tpu.memory_space<vmem>>, %arg4: memref<64x128xbf16, #tpu.memory_space<vmem>>, %arg5: memref<1x128xf32, #tpu.memory_space<vmem>>, %arg6: memref<8x128xf32, #tpu.memory_space<vmem>>) attributes {dimension_semantics = [#tpu.dimension_semantics<parallel>], iteration_bounds = array<i64: 1>, scalar_prefetch = 0 : i64, scratch_operands = 0 : i64, tpu.core_type = #tpu.core_type<tc>, window_params = [{transform_indices = @transform_0, window_bounds = array<i64: 8, 32>}, {pipeline_mode = #tpu.pipeline_mode<synchronous>, transform_indices = @transform_1, window_bounds = array<i64: 32, 64>}, {pipeline_mode = #tpu.pipeline_mode<synchronous>, transform_indices = @transform_2, window_bounds = array<i64: 1, 64>}, {pipeline_mode = #tpu.pipeline_mode<synchronous>, transform_indices = @transform_3, window_bounds = array<i64: 64, 128>}, {pipeline_mode = #tpu.pipeline_mode<synchronous>, transform_indices = @transform_4, window_bounds = array<i64: 1, 128>}, {transform_indices = @transform_5, window_bounds = array<i64: 8, 128>}]} {
    %c0 = arith.constant 0 : index
    %c0_0 = arith.constant 0 : index
    %0 = vector.load %arg1[%c0, %c0_0] : memref<8x32xf32, #tpu.memory_space<vmem>>, vector<8x32xf32>
    %1 = arith.truncf %0 : vector<8x32xf32> to vector<8x32xbf16>
    %c0_1 = arith.constant 0 : index
    %c0_2 = arith.constant 0 : index
    %2 = vector.load %arg2[%c0_1, %c0_2] : memref<32x64xbf16, #tpu.memory_space<vmem>>, vector<32x64xbf16>
    %cst = arith.constant dense<0.000000e+00> : vector<8x64xf32>
    %3 = tpu.matmul %1, %2, %cst {dimension_numbers = #tpu.dot_dimension_numbers<[1], [0], [0], [1], [0, 0, 1, 1], [], []>} : vector<8x32xbf16>, vector<32x64xbf16>, vector<8x64xf32> -> vector<8x64xf32>
    %c0_3 = arith.constant 0 : index
    %c0_4 = arith.constant 0 : index
    %4 = vector.load %arg3[%c0_3, %c0_4] : memref<1x64xf32, #tpu.memory_space<vmem>>, vector<1x64xf32>
    %5 = vector.broadcast %4 : vector<1x64xf32> to vector<8x64xf32>
    %6 = arith.addf %3, %5 : vector<8x64xf32>
    %cst_5 = arith.constant 0.000000e+00 : f32
    %7 = vector.broadcast %cst_5 : f32 to vector<8x64xf32>
    %8 = arith.maximumf %6, %7 : vector<8x64xf32>
    %9 = arith.truncf %8 : vector<8x64xf32> to vector<8x64xbf16>
    %c0_6 = arith.constant 0 : index
    %c0_7 = arith.constant 0 : index
    %10 = vector.load %arg4[%c0_6, %c0_7] : memref<64x128xbf16, #tpu.memory_space<vmem>>, vector<64x128xbf16>
    %cst_8 = arith.constant dense<0.000000e+00> : vector<8x128xf32>
    %11 = tpu.matmul %9, %10, %cst_8 {dimension_numbers = #tpu.dot_dimension_numbers<[1], [0], [0], [1], [0, 0, 1, 1], [], []>} : vector<8x64xbf16>, vector<64x128xbf16>, vector<8x128xf32> -> vector<8x128xf32>
    %c0_9 = arith.constant 0 : index
    %c0_10 = arith.constant 0 : index
    %12 = vector.load %arg5[%c0_9, %c0_10] : memref<1x128xf32, #tpu.memory_space<vmem>>, vector<1x128xf32>
    %13 = vector.broadcast %12 : vector<1x128xf32> to vector<8x128xf32>
    %14 = arith.addf %11, %13 : vector<8x128xf32>
    %c0_11 = arith.constant 0 : index
    %c0_12 = arith.constant 0 : index
    %15 = vector.load %arg6[%c0_11, %c0_12] : memref<8x128xf32, #tpu.memory_space<vmem>>, vector<8x128xf32>
    tpu.vector_store %arg6[%c0_11, %c0_12], %14 {strides = array<i32>} : memref<8x128xf32, #tpu.memory_space<vmem>>, vector<8x128xf32>,
    return
  }
  func.func @transform_0(%arg0: i32) -> (i32, i32) {
    %c0_i32 = arith.constant 0 : i32
    %c0_i32_0 = arith.constant 0 : i32
    return %arg0, %c0_i32 : i32, i32
  }
  func.func @transform_1(%arg0: i32) -> (i32, i32) {
    %c0_i32 = arith.constant 0 : i32
    %c0_i32_0 = arith.constant 0 : i32
    %c0_i32_1 = arith.constant 0 : i32
    return %c0_i32, %c0_i32_0 : i32, i32
  }
  func.func @transform_2(%arg0: i32) -> (i32, i32) {
    %c0_i32 = arith.constant 0 : i32
    %c0_i32_0 = arith.constant 0 : i32
    %c0_i32_1 = arith.constant 0 : i32
    return %c0_i32, %c0_i32_0 : i32, i32
  }
  func.func @transform_3(%arg0: i32) -> (i32, i32) {
    %c0_i32 = arith.constant 0 : i32
    %c0_i32_0 = arith.constant 0 : i32
    %c0_i32_1 = arith.constant 0 : i32
    return %c0_i32, %c0_i32_0 : i32, i32
  }
  func.func @transform_4(%arg0: i32) -> (i32, i32) {
    %c0_i32 = arith.constant 0 : i32
    %c0_i32_0 = arith.constant 0 : i32
    %c0_i32_1 = arith.constant 0 : i32
    return %c0_i32, %c0_i32_0 : i32, i32
  }
  func.func @transform_5(%arg0: i32) -> (i32, i32) {
    %c0_i32 = arith.constant 0 : i32
    %c0_i32_0 = arith.constant 0 : i32
    return %arg0, %c0_i32 : i32, i32
  }
}

</mosaic_0001>

<bundles_post_ra>
// kernel: forward.1
= control target key start
LH: loop header
LB: loop body
LE: loop exit
PB: predicated region body
PF: predicated region fallthrough
CT: control target
= control target key end

     0   :  { %10 = vsyncpa [#allocation3], 0  ;;  %s434_s0 = inlined_call_operand.hbm [shape: f32[8,32], index: 0, kind: input, shape index: {}]   ;;  %s435_s1 = inlined_call_operand.vmem [shape: bf16[32,64], index: 1, kind: input, shape index: {}]   ;;  %s436_s2 = inlined_call_operand.vmem [shape: f32[1,64], index: 2, kind: input, shape index: {}]   ;;  %s437_s3 = inlined_call_operand.hbm [shape: bf16[64,128], index: 3, kind: input, shape index: {}]   ;;  %s438_s4 = inlined_call_operand.vmem [shape: f32[1,128], index: 4, kind: input, shape index: {}]   ;;  %s439_s5 = inlined_call_operand.hbm [shape: f32[8,128], index: 5, kind: output, shape index: {}]  }
   0x1   :  { %11 = vsyncpa [#allocation6], 0 }
   0x2   :  { %12 = vsyncpa [#allocation4], 0  ;;  %s342_s18 = smov [#allocation2]   ;;  %s343_s20 = smov [#allocation5]  }
   0x3   :  { %s19_s19 = sshll.u32 %s342_s18, 4  ;;  %s32_s21 = sshll.u32 %s343_s20, 4  ;;  %s20_s19 = int_to_ptr.vmem [resolvable:$true] %s19_s19  ;;  %s379_s21 = int_to_ptr.vmem [resolvable:$true] %s32_s21 }
   0x4   :  { %s270_s24 = scalar_lea.hbm %s434_s0, 128 }
   0x5   :  { %p271_p0 = scmp.ne.s32.totalorder %s434_s0, %s270_s24  ;;  %p274_p1 = scmp.lt.u32.totalorder %s270_s24, %s434_s0 }
   0x7   :  { %p276_p2 = pnand %p274_p1, %p271_p0 }
   0x9   :  { %279 = shalt.err (!%p276_p2)
}
   0xa   :  { %s280_s29 = scalar_lea.vmem %s20_s19, 128  ;;  %p285_p4 = scmp.lt.s32.totalorder %s20_s19, %s20_s19 }
   0xb   :  { %p281_p3 = scmp.ne.s32.totalorder %s20_s19, %s280_s29  ;;  %p286_p5 = scmp.lt.s32.totalorder %s280_s29, %s280_s29 }
   0xd   :  { %p287_p6 = por %p286_p5, %p285_p4 }
   0xf   :  { %p288_p7 = pnand %p287_p6, %p281_p3 }
  0x11   :  { %291 = shalt.err (!%p288_p7)
}
  0x12   :  { %22 = dma.hbm_to_vmem [thread:$0]  %s434_s0, 128, %s20_s19, [#allocation3]  }
  0x13   :  { %s292_s9 = scalar_lea.hbm %s437_s3, 512 }
  0x14   :  { %p293_p8 = scmp.ne.s32.totalorder %s437_s3, %s292_s9  ;;  %p296_p9 = scmp.lt.u32.totalorder %s292_s9, %s437_s3 }
  0x16   :  { %p298_p10 = pnand %p296_p9, %p293_p8 }
  0x18   :  { %301 = shalt.err (!%p298_p10)
}
  0x19   :  { %s302_s14 = scalar_lea.vmem %s379_s21, 512  ;;  %p307_p12 = scmp.lt.s32.totalorder %s379_s21, %s379_s21 }
  0x1a   :  { %p303_p11 = scmp.ne.s32.totalorder %s379_s21, %s302_s14  ;;  %p308_p13 = scmp.lt.s32.totalorder %s302_s14, %s302_s14 }
  0x1c   :  { %p309_p0 = por %p308_p13, %p307_p12 }
  0x1e   :  { %p310_p1 = pnand %p309_p0, %p303_p11 }
  0x20   :  { %313 = shalt.err (!%p310_p1)
}
  0x21   :  { %s344_s0 = smov 64   ;;  %s345_s15 = smov 4  }
  0x22   :  { %38 = dma.hbm_to_vmem [thread:$0]  %s437_s3, 512, %s379_s21, [#allocation6], %s344_s0, %s344_s0, %s345_s15  }
  0x23   :  { %336 = dma.done.wait [#allocation3], 128  }
  0x24   :  { %337 = vsyncadd [#allocation3], 4294967168 }
  0x25   :  { %338 = dma.done.wait [#allocation6], 512  }
  0x26   :  { %339 = vsyncadd [#allocation6], 4294966784  ;;  %v346_v0 = vmov 0.0   ;;  %vm347_vm0 = vmmov 0   ;;  %v264_v1 = vld [vmem:[%s435_s1] sm:$0xff]   ;;  %v265_v2 = vld [vmem:[%s435_s1 + $0x8] sm:$0xff]  }
  0x27   :  { %237 = vmatprep.subr.bf16.mxu0 %v346_v0  ;;  %241 = vmatprep.mubr.msk.bf16.mxu0 %vm347_vm0, %v346_v0  ;;  %v48_v3 = vld [vmem:[#allocation2] sm:$0xff]  ;;  %v266_v4 = vld [vmem:[#allocation5] sm:$0xff]   ;;  %v267_v5 = vld [vmem:[#allocation5 + $0x8] sm:$0xff]   ;;  %vm73_vm1 = vcmask 261120   ;;  %vm158_vm2 = vcmask 523264   ;;  %s348_s24 = smov [#allocation7]  }
  0x28   :  { %245 = vmatprep.subr.bf16.mxu1 %v346_v0  ;;  %253 = vmatprep.mubr.msk.bf16.mxu1 %vm347_vm0, %v346_v0  ;;  %v49_v6 = vpack.c.bf16 %v48_v3, %v48_v3  ;;  %v268_v7 = vld [vmem:[#allocation5 + $0x10] sm:$0xff]   ;;  %v269_v8 = vld [vmem:[#allocation5 + $0x18] sm:$0xff]   ;;  %s209_s25 = sshll.u32 %s348_s24, 4  ;;  %s210_s25 = int_to_ptr.vmem [resolvable:$true] %s209_s25 }
  0x29   :  { %238 = vmatpush3.bf16.msra.mxu0 %v264_v1  ;;  %246 = vmatpush3.bf16.msra.mxu1 %v266_v4  ;;  %v219_v9 = vld [vmem:[%s436_s2] ss:$0 sm:$0xff]  ;;  %s314_s2 = scalar_lea.vmem %s210_s25, 128  ;;  %p319_p3 = scmp.lt.s32.totalorder %s210_s25, %s210_s25 }
  0x2a   :  { %239 = vmatprep.subr.bf16.mxu0 %v346_v0  ;;  %247 = vmatprep.subr.bf16.mxu1 %v346_v0  ;;  %v223_v17 = vld [vmem:[%s438_s4] ss:$0 sm:$0xff]  ;;  %p315_p2 = scmp.ne.s32.totalorder %s210_s25, %s314_s2  ;;  %p320_p4 = scmp.lt.s32.totalorder %s314_s2, %s314_s2 }
  0x2c   :  { %p321_p5 = por %p320_p4, %p319_p3 }
  0x2d   :  { %240 = vmatpush3.bf16.msra.mxu0 %v265_v2  ;;  %248 = vmatpush3.bf16.msra.mxu1 %v267_v5 }
  0x2e   :  { %249 = vmatprep.subr.bf16.mxu1 %v346_v0  ;;  %p322_p6 = pnand %p321_p5, %p315_p2 }
  0x30   :  { %242 = vmatmul.mubr.msk.bf16.vlgmr.msra.gmra.mrb[0].mxu0 %vm73_vm1, %v49_v6 }
  0x31   :  { %250 = vmatpush3.bf16.msra.mxu1 %v268_v7 }
  0x32   :  { %251 = vmatprep.subr.bf16.mxu1 %v346_v0 }
  0x35   :  { %252 = vmatpush3.bf16.msra.mxu1 %v269_v8 }
 0x103   :  { %v111_v10 = vpop.f32.mrb[0].mxu0 }
 0x104   :  { %v112_v11 = vadd.f32 %v219_v9, %v111_v10  ;;  %v243_v12 = vpop.f32.mrb[1].mxu0 }
 0x105   :  { %v114_v13 = vpop.f32.mrb[2].mxu0 }
 0x106   :  { %v117_v14 = vmax.f32 %v112_v11, 0.0  ;;  %v244_v15 = vpop.f32.mrb[3].mxu0 }
 0x108   :  { %v118_v16 = vpack.c.bf16 %v117_v14, %v117_v14 }
 0x10a   :  { %254 = vmatmul.mubr.msk.bf16.vlgmr.msra.gmra.mrb[0].mxu1 %vm158_vm2, %v118_v16 }
 0x1dd   :  { %v196_v18 = vpop.f32.mrb[0].mxu1 }
 0x1de   :  { %v197_v19 = vadd.f32 %v223_v17, %v196_v18  ;;  %v255_v20 = vpop.f32.mrb[1].mxu1 }
 0x1df   :  { %v199_v21 = vpop.f32.mrb[2].mxu1 }
 0x1e0   :  { %202 = vst [vmem:[#allocation7] sm:$0xff] %v197_v19  ;;  %v256_v22 = vpop.f32.mrb[3].mxu1 }
 0x1e1   :  { %325 = shalt.err (!%p322_p6)
}
 0x1e2   :  { %s326_s4 = scalar_lea.hbm %s439_s5, 128 }
 0x1e3   :  { %p327_p7 = scmp.ne.s32.totalorder %s439_s5, %s326_s4  ;;  %p330_p8 = scmp.lt.u32.totalorder %s326_s4, %s439_s5 }
 0x1e5   :  { %p332_p9 = pnand %p330_p8, %p327_p7 }
 0x1e7   :  { %335 = shalt.err (!%p332_p9)
}
 0x1e8   :  { %212 = dma.vmem_to_hbm [thread:$0]  %s210_s25, 128, %s439_s5, [#allocation4]  }
 0x1e9   :  { %340 = dma.done.wait [#allocation4], 128  }
 0x1ea   :  { %341 = vsyncadd [#allocation4], 4294967168 }
 0x1eb   :  { %216 = vsyncpa [#allocation3], 1 }
 0x1ec   :  { %217 = vsyncpa [#allocation6], 1 }
 0x1ed   :  { %218 = vsyncpa [#allocation4], 1 }

</bundles_post_ra>
